<compile_context>
chip_gen: v7x
topology: tpu7x:2x2x1
jax: 0.10.0
libtpu: 0.0.40
codegen_flags: <defaults>
</compile_context>

<pallas_src>
import math

import jax
import jax.numpy as jnp
from jax.experimental import pallas as pl
from jax.experimental.pallas import tpu as pltpu

_LANE = 128
_MiB = 1024 * 1024

# sqrt(2/pi) folded into the cubic's coefficients:
#   sqrt(2/pi) * (x + 0.044715 * x^3) == x * (_K1 + _K3 * x * x)
_K1 = math.sqrt(2.0 / math.pi)
_K3 = _K1 * 0.044715


def _detect_generation() -> int:
    """Best-effort TPU generation (5, 6, 7, ...); 0 if unknown."""
    try:
        kind = jax.devices()[0].device_kind.lower()
    except Exception:
        return 0
    for g in (7, 6, 5, 4, 3, 2):
        if f"v{g}" in kind or f"{g}x" in kind or f"tpu{g}" in kind:
            return g
    return 0


_GEN = _detect_generation()


def _gen_defaults():
    """Generation-aware (target_block_bytes, vmem_limit_bytes)."""
    if _GEN >= 7:      # 64 MiB physical VMEM per TC: stay well under it.
        block_bytes, vmem_limit = 4 * _MiB, 48 * _MiB
    elif _GEN == 6:    # 128 MiB VMEM: bigger tiles, raise the scoped limit.
        block_bytes, vmem_limit = 6 * _MiB, 96 * _MiB
    else:              # v5e / older / unknown: conservative.
        block_bytes, vmem_limit = 2 * _MiB, 32 * _MiB
    try:               # Clamp with the real capacity when the query works.
        cap = int(pltpu.get_tpu_info().vmem_capacity_bytes)
        vmem_limit = min(vmem_limit, (cap * 3) // 4)
        block_bytes = min(block_bytes, max(_MiB, vmem_limit // 8))
    except Exception:
        pass
    return block_bytes, vmem_limit


_DEFAULT_BLOCK_BYTES, _VMEM_LIMIT_BYTES = _gen_defaults()


def _compute_dtype(io_dtype):
    # bf16-native math on chips with bf16 VPU/EUP (v6e/v7x); f32 elsewhere
    # (v5e has no bf16 VPU/EUP) and for all non-bf16 inputs.
    if jnp.dtype(io_dtype) == jnp.dtype(jnp.bfloat16) and _GEN >= 6:
        return jnp.bfloat16
    return jnp.float32


def _make_kernel(compute_dtype):
    def kernel(x_ref, o_ref):
        x = x_ref[...].astype(compute_dtype)
        # z = sqrt(2/pi) * (x + 0.044715 * x^3), constants folded -> fewer VALU ops.
        z = x * (_K1 + _K3 * (x * x))
        # tanh stays a single EUP push; the rest is 3 cheap VALU ops.
        o_ref[...] = (x * (0.5 * (jnp.tanh(z) + 1.0))).astype(o_ref.dtype)
    return kernel


def _sublane_multiple(dtype) -> int:
    # f32 -> 8, bf16/f16 -> 16, int8/fp8 -> 32 (packed sublanes).
    itemsize = jnp.dtype(dtype).itemsize
    return 8 * max(1, 4 // max(itemsize, 1))


def _gelu_2d(x2d: jax.Array, *, target_block_bytes: int) -> jax.Array:
    rows, lane = x2d.shape
    itemsize = jnp.dtype(x2d.dtype).itemsize
    sub = _sublane_multiple(x2d.dtype)

    # Pick block rows so one block is ~target_block_bytes, (sublane,128)-aligned.
    target_rows = max(sub, target_block_bytes // (lane * itemsize))
    if target_rows >= rows:
        tr = rows                          # full-extent block: always legal
    else:
        tr = max(sub, (target_rows // sub) * sub)
    grid = (pl.cdiv(rows, tr),)            # partial last block masked by Pallas

    n = rows * lane
    cost = pl.CostEstimate(flops=8 * n, transcendentals=n,
                           bytes_accessed=2 * n * itemsize)
    kernel = _make_kernel(_compute_dtype(x2d.dtype))

    # v7x: only CORE_PARALLEL actually splits the grid across the 2 TensorCores
    # ("parallel" barely changes codegen).  Keep a safe fallback if rejected.
    if _GEN >= 7 and grid[0] >= 2:
        candidates = ((pltpu.CORE_PARALLEL,), (pltpu.ARBITRARY,))
    else:
        candidates = ((pltpu.ARBITRARY,),)

    def build(sem):
        return pl.pallas_call(
            kernel,
            out_shape=jax.ShapeDtypeStruct((rows, lane), x2d.dtype),
            grid=grid,
            in_specs=[pl.BlockSpec((tr, lane), lambda i: (i, 0))],
            out_specs=pl.BlockSpec((tr, lane), lambda i: (i, 0)),
            compiler_params=pltpu.CompilerParams(
                dimension_semantics=sem,
                vmem_limit_bytes=_VMEM_LIMIT_BYTES),
            cost_estimate=cost,
        )

    last_err = None
    for idx, sem in enumerate(candidates):
        try:
            out = build(sem)(x2d)
            if idx + 1 < len(candidates):
                jax.block_until_ready(out)   # surface async failures -> fallback
            return out
        except Exception as e:               # fallback path (e.g. CORE_PARALLEL)
            last_err = e
    raise last_err


def _gelu_tail(x2d: jax.Array) -> jax.Array:
    """<128-element tail: one tiny full-extent block, no grid."""
    return pl.pallas_call(
        _make_kernel(_compute_dtype(x2d.dtype)),
        out_shape=jax.ShapeDtypeStruct(x2d.shape, x2d.dtype),
    )(x2d)


def gelu(x: jax.Array, *, target_block_bytes: int | None = None) -> jax.Array:
    """tanh-approx GELU matching the PyTorch module's forward."""
    if target_block_bytes is None:
        target_block_bytes = _DEFAULT_BLOCK_BYTES
    orig_shape = x.shape
    total = x.size
    if total == 0:
        return x

    if total % _LANE == 0:
        # Fast path: free reshape to a lane-dense 2D slab, zero extra copies.
        out2d = _gelu_2d(x.reshape(total // _LANE, _LANE),
                         target_block_bytes=target_block_bytes)
        return out2d.reshape(orig_shape)

    # Ragged element count: 128-aligned prefix through the fast path, tiny
    # (<128 elem) tail through one full-extent block.  No pad+slice round-trip.
    flat = x.reshape(-1)
    aligned = (total // _LANE) * _LANE
    tail = _gelu_tail(flat[aligned:].reshape(1, total - aligned)).reshape(-1)
    if aligned == 0:
        return tail.reshape(orig_shape)
    head = _gelu_2d(flat[:aligned].reshape(-1, _LANE),
                    target_block_bytes=target_block_bytes).reshape(-1)
    return jnp.concatenate([head, tail]).reshape(orig_shape)


def gelu_ref(x):
    xf = x.astype(jnp.float32)
    c = math.sqrt(2.0 / math.pi)
    y = xf * 0.5 * (1.0 + jnp.tanh(c * (xf + 0.044715 * xf * xf * xf)))
    return y.astype(x.dtype)


if __name__ == "__main__":
    key = jax.random.PRNGKey(0)
    k0, k1, k2, k3 = jax.random.split(key, 4)

    # Primary case matching the module's expected usage.
    x = jax.random.normal(k0, (2, 4, 16, 16), dtype=jnp.float32)
    y = gelu(x)
    jax.block_until_ready(y)
    assert y.shape == x.shape and y.dtype == x.dtype
    assert jnp.allclose(y, gelu_ref(x), atol=1e-5, rtol=1e-5)

    # Multi-step grid with a partial (masked) last block (forced small tiles).
    x_m = jax.random.normal(k1, (48, 160, 128), dtype=jnp.float32)
    y_m = gelu(x_m, target_block_bytes=1 * _MiB)
    jax.block_until_ready(y_m)
    assert jnp.allclose(y_m, gelu_ref(x_m), atol=1e-5, rtol=1e-5)

    # Ragged element count (exercises the prefix/tail path; here tail only).
    x_r = jax.random.normal(k2, (3, 5, 7), dtype=jnp.float32)
    y_r = gelu(x_r)
    jax.block_until_ready(y_r)
    assert jnp.allclose(y_r, gelu_ref(x_r), atol=1e-5, rtol=1e-5)

    # bf16 I/O: bf16-native math on v6e/v7x, f32 compute on v5e/unknown.
    # Tolerance sized for ~a couple of bf16 ulps of end-to-end rounding.
    x_b = jax.random.normal(k3, (2, 8, 128), dtype=jnp.bfloat16)
    y_b = gelu(x_b)
    jax.block_until_ready(y_b)
    assert y_b.dtype == jnp.bfloat16
    assert jnp.allclose(y_b.astype(jnp.float32),
                        gelu_ref(x_b).astype(jnp.float32), atol=2e-2, rtol=2e-2)

    print("KERNEL_OK")
</pallas_src>

<mosaic_0001>
module attributes {stable_mosaic.version = 11 : i64} {
  func.func @kernel(%arg0: i32, %arg1: memref<16x128xf32, #tpu.memory_space<vmem>>, %arg2: memref<16x128xf32, #tpu.memory_space<vmem>>) attributes {dimension_semantics = [#tpu.dimension_semantics<arbitrary>], iteration_bounds = array<i64: 1>, scalar_prefetch = 0 : i64, scratch_operands = 0 : i64, tpu.core_type = #tpu.core_type<tc>, window_params = [{transform_indices = @transform_0, window_bounds = array<i64: 16, 128>}, {transform_indices = @transform_1, window_bounds = array<i64: 16, 128>}]} {
    %c0 = arith.constant 0 : index
    %c0_0 = arith.constant 0 : index
    %0 = vector.load %arg1[%c0, %c0_0] : memref<16x128xf32, #tpu.memory_space<vmem>>, vector<16x128xf32>
    %1 = arith.mulf %0, %0 : vector<16x128xf32>
    %cst = arith.constant 0.0356774069 : f32
    %2 = vector.broadcast %cst : f32 to vector<16x128xf32>
    %3 = arith.mulf %2, %1 : vector<16x128xf32>
    %cst_1 = arith.constant 0.797884583 : f32
    %4 = vector.broadcast %cst_1 : f32 to vector<16x128xf32>
    %5 = arith.addf %4, %3 : vector<16x128xf32>
    %6 = arith.mulf %0, %5 : vector<16x128xf32>
    %7 = math.tanh %6 : vector<16x128xf32>
    %cst_2 = arith.constant 1.000000e+00 : f32
    %8 = vector.broadcast %cst_2 : f32 to vector<16x128xf32>
    %9 = arith.addf %7, %8 : vector<16x128xf32>
    %cst_3 = arith.constant 5.000000e-01 : f32
    %10 = vector.broadcast %cst_3 : f32 to vector<16x128xf32>
    %11 = arith.mulf %10, %9 : vector<16x128xf32>
    %12 = arith.mulf %0, %11 : vector<16x128xf32>
    %c0_4 = arith.constant 0 : index
    %c0_5 = arith.constant 0 : index
    %13 = vector.load %arg2[%c0_4, %c0_5] : memref<16x128xf32, #tpu.memory_space<vmem>>, vector<16x128xf32>
    tpu.vector_store %arg2[%c0_4, %c0_5], %12 {strides = array<i32>} : memref<16x128xf32, #tpu.memory_space<vmem>>, vector<16x128xf32>,
    return
  }
  func.func @transform_0(%arg0: i32) -> (i32, i32) {
    %c0_i32 = arith.constant 0 : i32
    %c0_i32_0 = arith.constant 0 : i32
    return %arg0, %c0_i32 : i32, i32
  }
  func.func @transform_1(%arg0: i32) -> (i32, i32) {
    %c0_i32 = arith.constant 0 : i32
    %c0_i32_0 = arith.constant 0 : i32
    return %arg0, %c0_i32 : i32, i32
  }
}

</mosaic_0001>

<bundles_post_ra>
// kernel: tpu_custom_call.1
= control target key start
LH: loop header
LB: loop body
LE: loop exit
PB: predicated region body
PF: predicated region fallthrough
CT: control target
= control target key end

     0   :  { %6 = vsyncpa [#allocation3], 0  ;;  %s160_s0 = inlined_call_operand.hbm [shape: f32[16,128], index: 0, kind: input, shape index: {}]   ;;  %s161_s1 = inlined_call_operand.hbm [shape: f32[16,128], index: 1, kind: output, shape index: {}]  }
   0x1   :  { %7 = vsyncpa [#allocation4], 0  ;;  %s116_s6 = smov [#allocation2]   ;;  %s68_s10 = scalar_lea.hbm %s160_s0, 256 }
   0x2   :  { %s13_s7 = sshll.u32 %s116_s6, 4  ;;  %p69_p0 = scmp.ne.s32.totalorder %s160_s0, %s68_s10  ;;  %s14_s7 = int_to_ptr.vmem [resolvable:$true] %s13_s7 }
   0x3   :  { %p72_p1 = scmp.lt.u32.totalorder %s68_s10, %s160_s0 }
   0x5   :  { %p74_p2 = pnand %p72_p1, %p69_p0 }
   0x7   :  { %77 = shalt.err (!%p74_p2)
}
   0x8   :  { %s78_s15 = scalar_lea.vmem %s14_s7, 256  ;;  %p83_p4 = scmp.lt.s32.totalorder %s14_s7, %s14_s7 }
   0x9   :  { %p79_p3 = scmp.ne.s32.totalorder %s14_s7, %s78_s15  ;;  %p84_p5 = scmp.lt.s32.totalorder %s78_s15, %s78_s15 }
   0xb   :  { %p85_p6 = por %p84_p5, %p83_p4 }
   0xd   :  { %p86_p7 = pnand %p85_p6, %p79_p3 }
   0xf   :  { %89 = shalt.err (!%p86_p7)
}
  0x10   :  { %s117_s16 = smov 128   ;;  %s118_s17 = smov 8  }
  0x11   :  { %19 = dma.hbm_to_vmem [thread:$0]  %s160_s0, 256, %s14_s7, [#allocation3], %s117_s16, %s117_s16, %s118_s17  }
  0x12   :  { %112 = dma.done.wait [#allocation3], 256  }
  0x13   :  { %113 = vsyncadd [#allocation3], 4294967040  ;;  %v23_v0 = vld [vmem:[#allocation2] sm:$0xff]  ;;  %v24_v1 = vld [vmem:[#allocation2 + $0x8] sm:$0xff]  ;;  %s119_s0 = smov [#allocation5]  }
  0x14   :  { %v25_v2 = vmul.f32 %v23_v0, %v23_v0  ;;  %v26_v3 = vmul.f32 %v24_v1, %v24_v1  ;;  %s48_s20 = sshll.u32 %s119_s0, 4  ;;  %s49_s20 = int_to_ptr.vmem [resolvable:$true] %s48_s20 }
  0x15   :  { %s90_s21 = scalar_lea.vmem %s49_s20, 256  ;;  %p95_p9 = scmp.lt.s32.totalorder %s49_s20, %s49_s20 }
  0x16   :  { %v27_v4 = vmul.f32 0.035677407, %v25_v2  ;;  %v28_v5 = vmul.f32 0.035677407, %v26_v3  ;;  %p91_p8 = scmp.ne.s32.totalorder %s49_s20, %s90_s21  ;;  %p96_p10 = scmp.lt.s32.totalorder %s90_s21, %s90_s21 }
  0x18   :  { %v29_v6 = vadd.f32 0.7978846, %v27_v4  ;;  %v30_v7 = vadd.f32 0.7978846, %v28_v5  ;;  %p97_p11 = por %p96_p10, %p95_p9 }
  0x1a   :  { %v31_v8 = vmul.f32 %v29_v6, %v23_v0  ;;  %v32_v9 = vmul.f32 %v30_v7, %v24_v1  ;;  %p98_p12 = pnand %p97_p11, %p91_p8 }
  0x1c   :  { %64 = vtanh.f32 %v31_v8 }
  0x1d   :  { %66 = vtanh.f32 %v32_v9 }
  0x26   :  { %v65_v10 = vpop.eup %64 }
  0x27   :  { %v67_v11 = vpop.eup %66  ;;  %v35_v12 = vadd.f32 1.0, %v65_v10 }
  0x28   :  { %v36_v13 = vadd.f32 1.0, %v67_v11 }
  0x29   :  { %v37_v14 = vmul.f32 0.5, %v35_v12 }
  0x2a   :  { %v38_v15 = vmul.f32 0.5, %v36_v13 }
  0x2b   :  { %v39_v16 = vmul.f32 %v37_v14, %v23_v0 }
  0x2c   :  { %v40_v17 = vmul.f32 %v38_v15, %v24_v1 }
  0x2d   :  { %41 = vst [vmem:[#allocation5] sm:$0xff] %v39_v16 }
  0x2e   :  { %42 = vst [vmem:[#allocation5 + $0x8] sm:$0xff] %v40_v17 }
  0x2f   :  { %101 = shalt.err (!%p98_p12)
}
  0x30   :  { %s102_s24 = scalar_lea.hbm %s161_s1, 256 }
  0x31   :  { %p103_p13 = scmp.ne.s32.totalorder %s161_s1, %s102_s24  ;;  %p106_p0 = scmp.lt.u32.totalorder %s102_s24, %s161_s1 }
  0x33   :  { %p108_p1 = pnand %p106_p0, %p103_p13 }
  0x35   :  { %111 = shalt.err (!%p108_p1)
}
  0x36   :  { %54 = dma.vmem_to_hbm [thread:$0]  %s49_s20, 256, %s161_s1, [#allocation4], %s117_s16, %s117_s16, %s118_s17  }
  0x37   :  { %114 = dma.done.wait [#allocation4], 256  }
  0x38   :  { %115 = vsyncadd [#allocation4], 4294967040 }
  0x39   :  { %58 = vsyncpa [#allocation3], 1 }
  0x3a   :  { %59 = vsyncpa [#allocation4], 1 }

</bundles_post_ra>
